<compile_context>
chip_gen: v5e
topology: v5e:2x2
jax: 0.10.0
libtpu: 0.0.40
codegen_flags: <defaults>
</compile_context>

<pallas_src>
import functools

import jax
import jax.numpy as jnp
from jax.experimental import pallas as pl
from jax.experimental.pallas import tpu as pltpu


def _round_up(x, m):
    return (x + m - 1) // m * m


# ---------------------------------------------------------------------------
# Kernels
# ---------------------------------------------------------------------------

def _supcon_single_pass_kernel(a_ref, ct_ref, bias_ref, albl_ref, clbl_ref,
                               cnt_ref, out_ref, *, block_q, scale, has_col_pad):
    """One grid step per anchor-row tile; full contrast axis resident in VMEM."""
    i = pl.program_id(0)

    # [tq, Nc_pad] f32 logits; 1/temperature is already folded into the anchor
    # operand and contrast^T is pre-transposed -> no in-kernel transpose.
    logits = jnp.dot(a_ref[...], ct_ref[...], preferred_element_type=jnp.float32)
    if has_col_pad:
        logits = logits + bias_ref[...]        # -1e30 on padded columns

    nc = logits.shape[1]
    # Self-exclusion mask from two thin iotas + one broadcast compare.
    row = i * block_q + jax.lax.broadcasted_iota(jnp.int32, (block_q, 1), 0)
    col = jax.lax.broadcasted_iota(jnp.int32, (1, nc), 1)
    not_self = row != col                                            # [tq, nc]
    # Padded columns carry a sentinel label -> never positive.
    pos = jnp.logical_and(albl_ref[...] == clbl_ref[...], not_self)

    # Row max includes the self column (matches PyTorch's shift); padded cols
    # sit at -1e30 so they never win.  lse is exact for any finite shift.
    m = jnp.max(logits, axis=1, keepdims=True)
    e = jnp.where(not_self, jnp.exp(logits - m), 0.0)
    lse = m + jnp.log(jnp.sum(e, axis=1, keepdims=True))
    num = jnp.sum(jnp.where(pos, logits, 0.0), axis=1, keepdims=True)

    cnt = cnt_ref[...]
    # sum(mask*log_prob)/sum(mask) == (sum(mask*logits) - cnt*lse)/cnt
    mlpp = (num - cnt * lse) / jnp.maximum(cnt, 1.0)
    # Rows with no positives contribute 0 (PyTorch original yields NaN here).
    mlpp = jnp.where(cnt > 0.0, mlpp, 0.0)
    out_ref[...] = (scale * mlpp).astype(out_ref.dtype)


def _supcon_tiled_kernel(a_ref, ct_ref, bias_ref, albl_ref, clbl_ref, cnt_ref,
                         out_ref, m_ref, l_ref, num_ref,
                         *, block_q, block_k, scale, has_col_pad):
    """Fallback: flash-style online accumulation across the contrast axis."""
    i = pl.program_id(0)          # anchor-row tile   ("parallel")
    k = pl.program_id(1)          # contrast-col tile ("arbitrary", reduction)

    @pl.when(k == 0)
    def _init():
        m_ref[...] = jnp.full(m_ref.shape, -jnp.inf, dtype=jnp.float32)
        l_ref[...] = jnp.zeros(l_ref.shape, dtype=jnp.float32)
        num_ref[...] = jnp.zeros(num_ref.shape, dtype=jnp.float32)

    logits = jnp.dot(a_ref[...], ct_ref[...], preferred_element_type=jnp.float32)
    if has_col_pad:
        logits = logits + bias_ref[...]        # -1e30 on padded columns

    row = i * block_q + jax.lax.broadcasted_iota(jnp.int32, (block_q, 1), 0)
    col = k * block_k + jax.lax.broadcasted_iota(jnp.int32, (1, block_k), 1)
    not_self = row != col
    pos = jnp.logical_and(albl_ref[...] == clbl_ref[...], not_self)

    m_prev = m_ref[...]
    m_new = jnp.maximum(m_prev, jnp.max(logits, axis=1, keepdims=True))
    alpha = jnp.exp(m_prev - m_new)
    p = jnp.where(not_self, jnp.exp(logits - m_new), 0.0)
    l_ref[...] = alpha * l_ref[...] + jnp.sum(p, axis=1, keepdims=True)
    num_ref[...] = num_ref[...] + jnp.sum(jnp.where(pos, logits, 0.0),
                                          axis=1, keepdims=True)
    m_ref[...] = m_new

    @pl.when(k == pl.num_programs(1) - 1)
    def _finalize():
        lse = m_ref[...] + jnp.log(l_ref[...])
        cnt = cnt_ref[...]
        mlpp = (num_ref[...] - cnt * lse) / jnp.maximum(cnt, 1.0)
        mlpp = jnp.where(cnt > 0.0, mlpp, 0.0)
        out_ref[...] = (scale * mlpp).astype(out_ref.dtype)


# ---------------------------------------------------------------------------
# Wrapper
# ---------------------------------------------------------------------------

def _supcon_loss_mask_fallback(anchor, contrast, base_mask, anchor_count,
                               contrast_count, temperature, base_temperature):
    # TODO(synk): explicit (possibly asymmetric) `mask` argument has no label
    # representation; handled by this dense pure-JAX path, not the Pallas kernel.
    n_anchor = anchor.shape[0]
    n_contrast = contrast.shape[0]
    logits = (anchor.astype(jnp.float32) @ contrast.astype(jnp.float32).T) / temperature
    logits = logits - jnp.max(logits, axis=1, keepdims=True)
    mask = jnp.tile(base_mask.astype(jnp.float32), (anchor_count, contrast_count))
    logits_mask = 1.0 - jnp.eye(n_anchor, n_contrast, dtype=jnp.float32)
    mask = mask * logits_mask
    exp_logits = jnp.exp(logits) * logits_mask
    log_prob = logits - jnp.log(exp_logits.sum(1, keepdims=True))
    mlpp = (mask * log_prob).sum(1) / mask.sum(1)
    return jnp.mean(-(temperature / base_temperature) * mlpp)


def supcon_loss(features, labels=None, mask=None, *, temperature=0.07,
                contrast_mode='all', base_temperature=0.07,
                compute_dtype=jnp.bfloat16, block_q=256, block_k=512,
                single_pass=None):
    """JAX/Pallas equivalent of SupConLoss.forward (features: [bsz, n_views, ...])."""
    if features.ndim < 3:
        raise ValueError('`features` needs to be [bsz, n_views, ...]')
    if features.ndim > 3:
        features = features.reshape(features.shape[0], features.shape[1], -1)
    bsz, n_views, dim = features.shape

    if labels is not None and mask is not None:
        raise ValueError('Cannot define both `labels` and `mask`')

    # contrast_feature = cat(unbind(features, dim=1), dim=0) -> [n_views*bsz, dim]
    contrast_feature = jnp.transpose(features, (1, 0, 2)).reshape(n_views * bsz, dim)
    contrast_count = n_views
    if contrast_mode == 'one':
        anchor_feature = features[:, 0]
        anchor_count = 1
    elif contrast_mode == 'all':
        anchor_feature = contrast_feature
        anchor_count = contrast_count
    else:
        raise ValueError(f'Unknown mode: {contrast_mode}')

    if mask is not None:
        return _supcon_loss_mask_fallback(anchor_feature, contrast_feature, mask,
                                          anchor_count, contrast_count,
                                          temperature, base_temperature)

    if labels is None:
        sample_labels = jnp.arange(bsz, dtype=jnp.int32)          # SimCLR: eye(bsz)
    else:
        labels = jnp.asarray(labels).reshape(-1)
        if labels.shape[0] != bsz:
            raise ValueError('Num of labels does not match num of features')
        sample_labels = labels.astype(jnp.int32)

    anchor_labels = jnp.tile(sample_labels, (anchor_count,))       # [Na]
    contrast_labels = jnp.tile(sample_labels, (contrast_count,))   # [Nc]

    n_anchor = anchor_count * bsz
    n_contrast = contrast_count * bsz
    d_pad = _round_up(dim, 128)
    nc_128 = _round_up(n_contrast, 128)
    cbytes = jnp.dtype(compute_dtype).itemsize

    # ---- tile sizes -----------------------------------------------------------
    block_q = _round_up(block_q, 8)
    tq = min(block_q, _round_up(n_anchor, 8))
    # Keep >=2 anchor-row tiles whenever possible so the "parallel" grid axis
    # can be split across both TensorCores (v7x megacore).
    if n_anchor > 8 and _round_up(n_anchor, tq) // tq < 2:
        tq = min(tq, _round_up((n_anchor + 1) // 2, 8))

    # Single k pass whenever contrast^T (double-buffered) fits well in VMEM.
    if single_pass is None:
        use_single = nc_128 * d_pad * cbytes * 2 <= 10 * 1024 * 1024
    else:
        use_single = bool(single_pass)

    if use_single:
        # Bound the f32 logits-sized temporaries (~6 live) to ~12 MiB.
        max_tq = max(8, ((12 * 1024 * 1024) // max(1, 6 * nc_128 * 4)) // 8 * 8)
        tq = min(tq, max_tq)
        tk = nc_128
    else:
        block_k = _round_up(block_k, 128)
        tk = min(block_k, nc_128)

    na_pad = _round_up(n_anchor, tq)
    nc_pad = _round_up(n_contrast, tk)
    pad_a = na_pad - n_anchor
    pad_c = nc_pad - n_contrast
    has_col_pad = pad_c > 0

    # ---- operands -------------------------------------------------------------
    inv_t = 1.0 / float(temperature)
    # Fold 1/temperature into the anchor operand (f32) before the narrow cast.
    anchor_p = jnp.pad(anchor_feature.astype(jnp.float32) * inv_t,
                       ((0, pad_a), (0, d_pad - dim))).astype(compute_dtype)
    # contrast^T built directly: transpose -> pad once -> narrow cast.
    contrast_t = jnp.pad(contrast_feature.astype(jnp.float32).T,
                         ((0, d_pad - dim), (0, pad_c))).astype(compute_dtype)

    # Sentinels strictly larger than any real label (distinct for anchor vs
    # contrast padding) so padded columns can never register as positives.
    max_lbl = jnp.max(sample_labels)
    c_sent = max_lbl + 1
    a_sent = max_lbl + 2
    albl = anchor_labels
    if pad_a:
        albl = jnp.concatenate([albl, jnp.full((pad_a,), a_sent, jnp.int32)])
    clbl = contrast_labels
    if pad_c:
        clbl = jnp.concatenate([clbl, jnp.full((pad_c,), c_sent, jnp.int32)])
    albl = albl.reshape(na_pad, 1)
    clbl = clbl.reshape(1, nc_pad)

    # Additive column bias: 0 on valid columns, -1e30 on padded columns.
    col_bias = jnp.where(jnp.arange(nc_pad) < n_contrast, 0.0, -1e30
                         ).astype(jnp.float32).reshape(1, nc_pad)

    # Per-anchor positive counts precomputed from labels alone:
    # cnt_i = n_views * #{j: label_j == label_i} - 1 (self excluded).
    same = jnp.sum(sample_labels[:, None] == sample_labels[None, :], axis=1)
    cnt_sample = (contrast_count * same - 1).astype(jnp.float32)
    counts = jnp.tile(cnt_sample, (anchor_count,))
    if pad_a:
        counts = jnp.concatenate([counts, jnp.zeros((pad_a,), jnp.float32)])
    counts = counts.reshape(na_pad, 1)

    # ---- pallas call ----------------------------------------------------------
    scale = float(-(temperature / base_temperature))
    grid_i = na_pad // tq

    cost = pl.CostEstimate(
        flops=int(2 * na_pad * nc_pad * d_pad),
        transcendentals=int(na_pad * nc_pad),
        bytes_accessed=int(na_pad * d_pad * cbytes             # anchor, once
                           + grid_i * nc_pad * d_pad * cbytes  # contrast^T per row tile
                           + nc_pad * (4 + 4)                  # col bias + contrast labels
                           + na_pad * (4 + 4 + 4)))            # labels, counts, out

    cparams = pltpu.CompilerParams(
        dimension_semantics=("parallel",) if use_single else ("parallel", "arbitrary"),
        vmem_limit_bytes=32 * 1024 * 1024)

    if use_single:
        kernel = functools.partial(_supcon_single_pass_kernel,
                                   block_q=tq, scale=scale, has_col_pad=has_col_pad)
        per_row = pl.pallas_call(
            kernel,
            out_shape=jax.ShapeDtypeStruct((na_pad, 1), jnp.float32),
            grid_spec=pltpu.PrefetchScalarGridSpec(
                num_scalar_prefetch=0,
                grid=(grid_i,),
                in_specs=[
                    pl.BlockSpec((tq, d_pad), lambda i: (i, 0)),      # anchor (pre-scaled)
                    pl.BlockSpec((d_pad, nc_pad), lambda i: (0, 0)),  # contrast^T (resident)
                    pl.BlockSpec((1, nc_pad), lambda i: (0, 0)),      # column bias
                    pl.BlockSpec((tq, 1), lambda i: (i, 0)),          # anchor labels
                    pl.BlockSpec((1, nc_pad), lambda i: (0, 0)),      # contrast labels
                    pl.BlockSpec((tq, 1), lambda i: (i, 0)),          # positive counts
                ],
                out_specs=pl.BlockSpec((tq, 1), lambda i: (i, 0)),
            ),
            compiler_params=cparams,
            cost_estimate=cost,
        )(anchor_p, contrast_t, col_bias, albl, clbl, counts)
    else:
        kernel = functools.partial(_supcon_tiled_kernel,
                                   block_q=tq, block_k=tk, scale=scale,
                                   has_col_pad=has_col_pad)
        per_row = pl.pallas_call(
            kernel,
            out_shape=jax.ShapeDtypeStruct((na_pad, 1), jnp.float32),
            grid_spec=pltpu.PrefetchScalarGridSpec(
                num_scalar_prefetch=0,
                grid=(grid_i, nc_pad // tk),
                in_specs=[
                    pl.BlockSpec((tq, d_pad), lambda i, k: (i, 0)),   # anchor tile
                    pl.BlockSpec((d_pad, tk), lambda i, k: (0, k)),   # contrast^T tile
                    pl.BlockSpec((1, tk), lambda i, k: (0, k)),       # column bias tile
                    pl.BlockSpec((tq, 1), lambda i, k: (i, 0)),       # anchor labels
                    pl.BlockSpec((1, tk), lambda i, k: (0, k)),       # contrast labels
                    pl.BlockSpec((tq, 1), lambda i, k: (i, 0)),       # positive counts
                ],
                out_specs=pl.BlockSpec((tq, 1), lambda i, k: (i, 0)),
                scratch_shapes=[pltpu.VMEM((tq, 1), jnp.float32)] * 3,  # m, l, num
            ),
            compiler_params=cparams,
            cost_estimate=cost,
        )(anchor_p, contrast_t, col_bias, albl, clbl, counts)

    # Final scalar mean over the real anchor rows (padded rows dropped).
    return jnp.mean(per_row[:n_anchor, 0])


# ---------------------------------------------------------------------------
# Pure-JAX reference (mirrors the PyTorch forward, same operand rounding)
# ---------------------------------------------------------------------------

def _supcon_loss_ref(features, labels=None, temperature=0.07,
                     base_temperature=0.07, contrast_mode='all',
                     compute_dtype=jnp.float32):
    bsz, n_views, dim = features.shape
    cf = jnp.transpose(features, (1, 0, 2)).reshape(n_views * bsz, dim)
    if contrast_mode == 'one':
        af = features[:, 0]
        anchor_count = 1
    else:
        af = cf
        anchor_count = n_views
    a = (af.astype(jnp.float32) * (1.0 / temperature)).astype(compute_dtype).astype(jnp.float32)
    c = cf.astype(compute_dtype).astype(jnp.float32)
    logits = a @ c.T
    logits = logits - jnp.max(logits, axis=1, keepdims=True)
    n_a = anchor_count * bsz
    n_c = n_views * bsz
    lmask = 1.0 - jnp.eye(n_a, n_c)
    if labels is None:
        base = jnp.eye(bsz, dtype=jnp.float32)
    else:
        lab = jnp.asarray(labels).reshape(-1, 1)
        base = (lab == lab.T).astype(jnp.float32)
    mask = jnp.tile(base, (anchor_count, n_views)) * lmask
    exp_logits = jnp.exp(logits) * lmask
    log_prob = logits - jnp.log(exp_logits.sum(1, keepdims=True))
    mlpp = (mask * log_prob).sum(1) / mask.sum(1)
    return jnp.mean(-(temperature / base_temperature) * mlpp)


if __name__ == "__main__":
    key = jax.random.PRNGKey(0)
    k1, k2, k3 = jax.random.split(key, 3)

    # 1) SimCLR path (no labels): single-k-pass kernel, row/col/feature padding.
    bsz, n_views, dim = 8, 2, 32
    feats = jax.random.normal(k1, (bsz, n_views, dim), dtype=jnp.float32)
    feats = feats / jnp.linalg.norm(feats, axis=-1, keepdims=True)
    loss1 = jax.block_until_ready(supcon_loss(feats))
    ref1 = _supcon_loss_ref(feats, compute_dtype=jnp.bfloat16)
    assert jnp.allclose(loss1, ref1, atol=2e-3, rtol=2e-3), (loss1, ref1)

    # 2) Supervised labels: forced tiled-k fallback, several i and k tiles.
    bsz2, nv2, d2 = 72, 2, 40
    f2 = jax.random.normal(k2, (bsz2, nv2, d2), dtype=jnp.float32)
    f2 = f2 / jnp.linalg.norm(f2, axis=-1, keepdims=True)
    lab2 = jnp.arange(bsz2, dtype=jnp.int32) % 9
    loss2 = jax.block_until_ready(
        supcon_loss(f2, labels=lab2, block_q=64, block_k=128, single_pass=False))
    ref2 = _supcon_loss_ref(f2, labels=lab2, compute_dtype=jnp.bfloat16)
    assert jnp.allclose(loss2, ref2, atol=2e-3, rtol=2e-3), (loss2, ref2)

    # 3) contrast_mode='one' with labels: single-pass path, asymmetric Na != Nc.
    bsz3, nv3, d3 = 10, 3, 48
    f3 = jax.random.normal(k3, (bsz3, nv3, d3), dtype=jnp.float32)
    f3 = f3 / jnp.linalg.norm(f3, axis=-1, keepdims=True)
    lab3 = jnp.arange(bsz3, dtype=jnp.int32) % 4
    loss3 = jax.block_until_ready(
        supcon_loss(f3, labels=lab3, contrast_mode='one'))
    ref3 = _supcon_loss_ref(f3, labels=lab3, contrast_mode='one',
                            compute_dtype=jnp.bfloat16)
    assert jnp.allclose(loss3, ref3, atol=2e-3, rtol=2e-3), (loss3, ref3)

    print("KERNEL_OK")
</pallas_src>

<mosaic_0001>
module attributes {stable_mosaic.version = 11 : i64} {
  func.func @_supcon_single_pass_kernel(%arg0: i32, %arg1: memref<8x128xbf16, #tpu.memory_space<vmem>>, %arg2: memref<128x128xbf16, #tpu.memory_space<vmem>>, %arg3: memref<1x128xf32, #tpu.memory_space<vmem>>, %arg4: memref<8x1xi32, #tpu.memory_space<vmem>>, %arg5: memref<1x128xi32, #tpu.memory_space<vmem>>, %arg6: memref<8x1xf32, #tpu.memory_space<vmem>>, %arg7: memref<8x1xf32, #tpu.memory_space<vmem>>) attributes {dimension_semantics = [#tpu.dimension_semantics<parallel>], iteration_bounds = array<i64: 2>, scalar_prefetch = 0 : i64, scratch_operands = 0 : i64, tpu.core_type = #tpu.core_type<tc>, window_params = [{transform_indices = @transform_0, window_bounds = array<i64: 8, 128>}, {pipeline_mode = #tpu.pipeline_mode<synchronous>, transform_indices = @transform_1, window_bounds = array<i64: 128, 128>}, {pipeline_mode = #tpu.pipeline_mode<synchronous>, transform_indices = @transform_2, window_bounds = array<i64: 1, 128>}, {transform_indices = @transform_3, window_bounds = array<i64: 8, 1>}, {pipeline_mode = #tpu.pipeline_mode<synchronous>, transform_indices = @transform_4, window_bounds = array<i64: 1, 128>}, {transform_indices = @transform_5, window_bounds = array<i64: 8, 1>}, {transform_indices = @transform_6, window_bounds = array<i64: 8, 1>}]} {
    %c0 = arith.constant 0 : index
    %c0_0 = arith.constant 0 : index
    %0 = vector.load %arg1[%c0, %c0_0] : memref<8x128xbf16, #tpu.memory_space<vmem>>, vector<8x128xbf16>
    %c0_1 = arith.constant 0 : index
    %c0_2 = arith.constant 0 : index
    %1 = vector.load %arg2[%c0_1, %c0_2] : memref<128x128xbf16, #tpu.memory_space<vmem>>, vector<128x128xbf16>
    %cst = arith.constant dense<0.000000e+00> : vector<8x128xf32>
    %2 = tpu.matmul %0, %1, %cst {dimension_numbers = #tpu.dot_dimension_numbers<[1], [0], [0], [1], [0, 0, 1, 1], [], []>} : vector<8x128xbf16>, vector<128x128xbf16>, vector<8x128xf32> -> vector<8x128xf32>
    %c0_3 = arith.constant 0 : index
    %c0_4 = arith.constant 0 : index
    %3 = vector.load %arg3[%c0_3, %c0_4] : memref<1x128xf32, #tpu.memory_space<vmem>>, vector<1x128xf32>
    %4 = vector.broadcast %3 : vector<1x128xf32> to vector<8x128xf32>
    %5 = arith.addf %2, %4 : vector<8x128xf32>
    %c8_i32 = arith.constant 8 : i32
    %6 = arith.muli %arg0, %c8_i32 : i32
    %7 = tpu.iota {dimensions = array<i32: 0>} : vector<8x1xi32>
    %8 = vector.broadcast %6 : i32 to vector<8x1xi32>
    %9 = arith.addi %8, %7 : vector<8x1xi32>
    %10 = tpu.iota {dimensions = array<i32: 1>} : vector<1x128xi32>
    %11 = vector.broadcast %9 : vector<8x1xi32> to vector<8x128xi32>
    %12 = vector.broadcast %10 : vector<1x128xi32> to vector<8x128xi32>
    %13 = arith.cmpi ne, %11, %12 : vector<8x128xi32>
    %c0_5 = arith.constant 0 : index
    %c0_6 = arith.constant 0 : index
    %14 = vector.load %arg4[%c0_5, %c0_6] : memref<8x1xi32, #tpu.memory_space<vmem>>, vector<8x1xi32>
    %c0_7 = arith.constant 0 : index
    %c0_8 = arith.constant 0 : index
    %15 = vector.load %arg5[%c0_7, %c0_8] : memref<1x128xi32, #tpu.memory_space<vmem>>, vector<1x128xi32>
    %16 = vector.broadcast %14 : vector<8x1xi32> to vector<8x128xi32>
    %17 = vector.broadcast %15 : vector<1x128xi32> to vector<8x128xi32>
    %18 = arith.cmpi eq, %16, %17 : vector<8x128xi32>
    %19 = arith.andi %18, %13 : vector<8x128xi1>
    %cst_9 = arith.constant dense<0xFF800000> : vector<8xf32>
    %20 = vector.multi_reduction <maximumf>, %5, %cst_9 [1] : vector<8x128xf32> to vector<8xf32>
    %21 = vector.shape_cast %20 : vector<8xf32> to vector<8x1xf32>
    %22 = vector.broadcast %21 : vector<8x1xf32> to vector<8x128xf32>
    %23 = arith.subf %5, %22 : vector<8x128xf32>
    %24 = math.exp %23 : vector<8x128xf32>
    %cst_10 = arith.constant 0.000000e+00 : f32
    %25 = vector.broadcast %cst_10 : f32 to vector<8x128xf32>
    %26 = arith.select %13, %24, %25 : vector<8x128xi1>, vector<8x128xf32>
    %cst_11 = arith.constant dense<0.000000e+00> : vector<8xf32>
    %27 = vector.multi_reduction <add>, %26, %cst_11 [1] : vector<8x128xf32> to vector<8xf32>
    %28 = vector.shape_cast %27 : vector<8xf32> to vector<8x1xf32>
    %29 = math.log %28 : vector<8x1xf32>
    %30 = arith.addf %21, %29 : vector<8x1xf32>
    %cst_12 = arith.constant 0.000000e+00 : f32
    %31 = vector.broadcast %cst_12 : f32 to vector<8x128xf32>
    %32 = arith.select %19, %5, %31 : vector<8x128xi1>, vector<8x128xf32>
    %cst_13 = arith.constant dense<0.000000e+00> : vector<8xf32>
    %33 = vector.multi_reduction <add>, %32, %cst_13 [1] : vector<8x128xf32> to vector<8xf32>
    %34 = vector.shape_cast %33 : vector<8xf32> to vector<8x1xf32>
    %c0_14 = arith.constant 0 : index
    %c0_15 = arith.constant 0 : index
    %35 = vector.load %arg6[%c0_14, %c0_15] : memref<8x1xf32, #tpu.memory_space<vmem>>, vector<8x1xf32>
    %36 = arith.mulf %35, %30 : vector<8x1xf32>
    %37 = arith.subf %34, %36 : vector<8x1xf32>
    %cst_16 = arith.constant 1.000000e+00 : f32
    %38 = vector.broadcast %cst_16 : f32 to vector<8x1xf32>
    %39 = arith.maximumf %35, %38 : vector<8x1xf32>
    %40 = arith.divf %37, %39 : vector<8x1xf32>
    %cst_17 = arith.constant 0.000000e+00 : f32
    %41 = vector.broadcast %cst_17 : f32 to vector<8x1xf32>
    %42 = arith.cmpf ogt, %35, %41 : vector<8x1xf32>
    %cst_18 = arith.constant 0.000000e+00 : f32
    %43 = vector.broadcast %cst_18 : f32 to vector<8x1xf32>
    %44 = arith.select %42, %40, %43 : vector<8x1xi1>, vector<8x1xf32>
    %cst_19 = arith.constant -1.000000e+00 : f32
    %45 = vector.broadcast %cst_19 : f32 to vector<8x1xf32>
    %46 = arith.mulf %45, %44 : vector<8x1xf32>
    %c0_20 = arith.constant 0 : index
    %c0_21 = arith.constant 0 : index
    %47 = vector.load %arg7[%c0_20, %c0_21] : memref<8x1xf32, #tpu.memory_space<vmem>>, vector<8x1xf32>
    tpu.vector_store %arg7[%c0_20, %c0_21], %46 {strides = array<i32>} : memref<8x1xf32, #tpu.memory_space<vmem>>, vector<8x1xf32>,
    return
  }
  func.func @transform_0(%arg0: i32) -> (i32, i32) {
    %c0_i32 = arith.constant 0 : i32
    %c0_i32_0 = arith.constant 0 : i32
    return %arg0, %c0_i32 : i32, i32
  }
  func.func @transform_1(%arg0: i32) -> (i32, i32) {
    %c0_i32 = arith.constant 0 : i32
    %c0_i32_0 = arith.constant 0 : i32
    %c0_i32_1 = arith.constant 0 : i32
    return %c0_i32, %c0_i32_0 : i32, i32
  }
  func.func @transform_2(%arg0: i32) -> (i32, i32) {
    %c0_i32 = arith.constant 0 : i32
    %c0_i32_0 = arith.constant 0 : i32
    %c0_i32_1 = arith.constant 0 : i32
    return %c0_i32, %c0_i32_0 : i32, i32
  }
  func.func @transform_3(%arg0: i32) -> (i32, i32) {
    %c0_i32 = arith.constant 0 : i32
    %c0_i32_0 = arith.constant 0 : i32
    return %arg0, %c0_i32 : i32, i32
  }
  func.func @transform_4(%arg0: i32) -> (i32, i32) {
    %c0_i32 = arith.constant 0 : i32
    %c0_i32_0 = arith.constant 0 : i32
    %c0_i32_1 = arith.constant 0 : i32
    return %c0_i32, %c0_i32_0 : i32, i32
  }
  func.func @transform_5(%arg0: i32) -> (i32, i32) {
    %c0_i32 = arith.constant 0 : i32
    %c0_i32_0 = arith.constant 0 : i32
    return %arg0, %c0_i32 : i32, i32
  }
  func.func @transform_6(%arg0: i32) -> (i32, i32) {
    %c0_i32 = arith.constant 0 : i32
    %c0_i32_0 = arith.constant 0 : i32
    return %arg0, %c0_i32 : i32, i32
  }
}

</mosaic_0001>

<bundles_post_ra>
// kernel: tpu_custom_call.1
= control target key start
LH: loop header
LB: loop body
LE: loop exit
PB: predicated region body
PF: predicated region fallthrough
CT: control target
= control target key end

     0   :  { %11 = vsyncpa [#allocation3], 0  ;;  %s689_s21 = smov 0   ;;  %s732_s0 = inlined_call_operand.vmem [shape: bf16[16,128], index: 0, kind: input, shape index: {}]   ;;  %s733_s1 = inlined_call_operand.hbm [shape: bf16[128,128], index: 1, kind: input, shape index: {}]   ;;  %s734_s2 = inlined_call_operand.vmem [shape: f32[1,128], index: 2, kind: input, shape index: {}]   ;;  %s735_s3 = inlined_call_operand.vmem [shape: s32[16,1], index: 3, kind: input, shape index: {}]   ;;  %s736_s4 = inlined_call_operand.vmem [shape: s32[1,128], index: 4, kind: input, shape index: {}]   ;;  %s737_s5 = inlined_call_operand.vmem [shape: f32[16,1], index: 5, kind: input, shape index: {}]   ;;  %s738_s6 = inlined_call_operand.vmem [shape: f32[16,1], index: 6, kind: output, shape index: {}]  }
   0x1 LB: > { %s200_s24 = sshll.u32 %s733_s1, 4  ;;  %s698_s25 = sadd.s32 4294967295, %s648_s21   ;;  %s648_s21 = sphi %s689_s21, %s17_s21   ;;  %s201_s24 = int_to_ptr.hbm [resolvable:$true] %s200_s24 }
   0x2   : > { %p525_p0 = scmp.ge.s32.totalorder %s648_s21, 1  ;;  %p189_p1 = scmp.lt.s32.totalorder %s648_s21, 3 }
   0x3   : > { %p585_p2 = scmp.eq.s32.totalorder %s698_s25, 0  ;;  %s650_s26 = smov [#allocation2]  }
   0x4   : > { %p190_p3 = pnand %p525_p0, %p189_p1  ;;  %s202_s27 = sshll.u32 %s650_s26, 4  ;;  %s203_s27 = int_to_ptr.vmem [resolvable:$true] %s202_s27 }
   0x5   : > { %s651_s28 = smov 64   ;;  %s652_s29 = smov 4  }
   0x6   : > { %p581_p4 = pneg %p190_p3  ;;  %245 = sbr.rel (%p190_p3) target bundleno = 437 (0x1b5), region = 44 }
   0x8   : > { %p582_p5 = pnand %p585_p2, %p581_p4 }
   0xa   : > { %584 = dma.hbm_to_vmem [thread:$0]  (!%p582_p5), %s201_s24, 1024, %s203_s27, [#allocation3], %s651_s28, %s651_s28, %s652_s29  }
   0xb   : > { %643 = dma.done.wait (%p585_p2), [#allocation3], 1024  }
   0xc   : > { %645 = vsyncadd (%p585_p2), [#allocation3], 4294966272  ;;  %v576_v0 = vld [vmem:[#allocation2 + $0x38] sm:$0xff]  ;;  %v575_v1 = vld [vmem:[#allocation2 + $0x30] sm:$0xff]  ;;  %p282_p6 = scmp.lt.s32.totalorder %s698_s25, 1  ;;  %v653_v9 = vmov 0   ;;  %v381_v15 = vlaneseq }
   0xd   : > { %367 = vmatpush.bf16.msra.mxu0 %v576_v0  ;;  %v574_v2 = vld [vmem:[#allocation2 + $0x28] sm:$0xff]  ;;  %v573_v3 = vld [vmem:[#allocation2 + $0x20] sm:$0xff]  ;;  %v572_v4 = vld [vmem:[#allocation2 + $0x18] sm:$0xff]  ;;  %599 = vset.pattern.permute.xlu0 %v653_v9  ;;  %s566_s17 = sshll.u32 %s698_s25, 3  ;;  %vm432_vm8 = vcmask 7168  }
   0xe   : > { %v571_v5 = vld [vmem:[#allocation2 + $0x10] sm:$0xff]  ;;  %s283_s30 = scalar_select %p282_p6, %s698_s25, 1  ;;  %v570_v6 = vld [vmem:[#allocation2 + $0x8] sm:$0xff]  ;;  %v569_v7 = vld [vmem:[#allocation2] sm:$0xff]  ;;  %v382_v18 = vshrl.u32 %v381_v15, 7  ;;  %v383_v19 = vstv %s566_s17  ;;  %v386_v22 = vand.u32 127, %v381_v15 }
   0xf   : > { %v600_v10 = vld [vmem:[%s734_s2] ss:$0 sm:$0xff] }
  0x10   : > { %s530_s7 = sshll.u32 %s283_s30, 2  ;;  %s711_s13 = sshll.u32 %s283_s30, 3  ;;  %v384_v21 = vadd.s32 %v383_v19, %v382_v18  ;;  %v601_v25 = vld [vmem:[%s736_s4] ss:$0 sm:$0xff] }
  0x11   : > { %368 = vmatpush.bf16.msra.mxu0 %v575_v1  ;;  %s285_s10 = scalar_lea.vmem %s732_s0, %s530_s7  ;;  %s289_s16 = scalar_lea.vmem %s735_s3, %s711_s13 }
  0x12   : > { %v298_v8 = vld [vmem:[%s285_s10] sm:$0xf]  ;;  %vm387_vm0 = vcmp.ne.s32.totalorder %v384_v21, %v386_v22  ;;  %s293_s23 = scalar_lea.vmem %s737_s5, %s711_s13  ;;  %s297_s26 = scalar_lea.vmem %s738_s6, %s711_s13 }
  0x13   : > { %v388_v14 = vld [vmem:[%s289_s16] sm:$0xff] }
  0x14   : > { %v410_v28 = vld [vmem:[%s293_s23] sm:$0xff] }
  0x15   : > { %369 = vmatpush.bf16.msra.mxu0 %v574_v2  ;;  %v413_v29 = vmax.f32 %v410_v28, 1.0  ;;  %vm429_vm7 = vcmp.gt.f32.partialorder %v410_v28, 0.0 }
  0x17   : > { %vm419_vm3 = vweird.f32 %v413_v29  ;;  %v425_v35 = vand.u32 2147483648, %v413_v29  ;;  %v423_v37 = vand.u32 2147483647, %v413_v29 }
  0x19   : > { %370 = vmatpush.bf16.msra.mxu0 %v573_v3  ;;  %v426_v40 = vor.u32 1.1754944e-38, %v425_v35  ;;  %vm424_vm6 = vcmp.eq.f32.partialorder %v423_v37, 8.507059e+37 }
  0x1d   : > { %371 = vmatpush.bf16.msra.mxu0 %v572_v4 }
  0x21   : > { %372 = vmatpush.bf16.msra.mxu0 %v571_v5 }
  0x25   : > { %373 = vmatpush.bf16.msra.mxu0 %v570_v6 }
  0x29   : > { %374 = vmatpush.bf16.msra.mxu0 %v569_v7 }
  0x2c   : > { %375 = vmatmul.bf16.vlgmr.msra.gmra.mxu0 %v298_v8 }
  0xa9   : > { %v376_v11 = vpop.f32.mrf.mxu0 }
  0xaa   : > { %v377_v12 = vadd.f32 %v600_v10, %v376_v11 }
  0xac   : > { %396 = vmax.xlane.f32.xlu0 %v377_v12 }
  0xb1   : > { %v378_v13 = vpop.f32.mrf.mxu0 }
  0xc0   : > { %391 = vperm.xlu0 %599, %v388_v14  }
 0x11f   : > { %v397_v16 = vpop.xlane.xlu0 %396 }
 0x120   : > { %v398_v17 = vsub.f32 %v377_v12, %v397_v16 }
 0x122   : > { %v399_v20 = vmul.f32 1.442695, %v398_v17 }
 0x124   : > { %602 = vpow2.f32 %v399_v20 }
 0x125   : > { %604 = vrcp.f32 %v413_v29 }
 0x12a   : > { %v603_v23 = vpop.eup %602 }
 0x12b   : > { %v401_v24 = vsel %vm387_vm0, %v603_v23, 0.0  ;;  %v605_v30 = vpop.eup %604 }
 0x12c   : > { %402 = vadd.xlane.f32.xlu1 %v401_v24  ;;  %v415_v31 = vmul.f32 %v605_v30, %v413_v29  ;;  %vm420_vm4 = vweird.f32 %v605_v30 }
 0x12d   : > { %vm421_vm5 = vmor %vm419_vm3, %vm420_vm4 }
 0x12e   : > { %v416_v32 = vsub.f32 1.0, %v415_v31 }
 0x130   : > { %v417_v34 = vmul.f32 %v605_v30, %v416_v32 }
 0x132   : > { %v392_v26 = vpop.permute.xlu0 %391  ;;  %v418_v36 = vadd.f32 %v605_v30, %v417_v34 }
 0x133   : > { %vm394_vm1 = vcmp.eq.s32.totalorder %v392_v26, %v601_v25 }
 0x134   : > { %vm395_vm2 = vmand %vm394_vm1, %vm387_vm0  ;;  %v422_v42 = vsel %vm421_vm5, %v605_v30, %v418_v36 }
 0x135   : > { %v407_v27 = vsel %vm395_vm2, %v377_v12, 0.0  ;;  %v427_v44 = vsel %vm424_vm6, %v426_v40, %v422_v42 }
 0x136   : > { %408 = vadd.xlane.f32.xlu1 %v407_v27 }
 0x19f   : > { %v403_v33 = vpop.xlane.xlu1 %402 }
 0x1a0   : > { %606 = vlog2.f32 %v403_v33 }
 0x1a6   : > { %v607_v38 = vpop.eup %606 }
 0x1a7   : > { %v405_v39 = vmul.f32 0.6931472, %v607_v38 }
 0x1a9   : > { %v406_v41 = vadd.f32 %v405_v39, %v397_v16  ;;  %v409_v45 = vpop.xlane.xlu1 %408 }
 0x1ab   : > { %v411_v43 = vmul.f32 %v410_v28, %v406_v41 }
 0x1ad   : > { %v412_v46 = vsub.f32 %v409_v45, %v411_v43 }
 0x1af   : > { %v428_v47 = vmul.f32 %v427_v44, %v412_v46 }
 0x1b1   : > { %v430_v48 = vsel %vm429_vm7, %v428_v47, 0.0 }
 0x1b2   : > { %v431_v49 = vmul.f32 -1.0, %v430_v48 }
 0x1b4   : > { %433 = vst.msk [vmem:[%s297_s26] sm:$0xff] %vm432_vm8, %v431_v49 }
 0x1b5 PF: > { %s17_s21 = sadd.s32 1, %s648_s21  }
 0x1b6   : > { %p14_p7 = scmp.ge.s32.totalorder %s17_s21, 4  }
 0x1b8   :  { %16 = sbr.rel (!%p14_p7) target bundleno = 1 (0x1), region = 85 }
 0x1bd   :  { %453 = vsyncpa [#allocation3], 1 }
 0x1be   :  { %455 = vsyncpa [#allocation3 + $0x1], 1 }

</bundles_post_ra>
